<compile_context>
chip_gen: v6e
topology: v6e:2x2x1
jax: 0.10.0
libtpu: 0.0.40
codegen_flags: <defaults>
</compile_context>

<pallas_src>
import jax
import jax.numpy as jnp
from jax import lax
from jax.experimental import pallas as pl
from jax.experimental.pallas import tpu as pltpu


# ----------------------------------------------------------------------------- kernel
def _fused_forward_kernel(cnt_um_ref, cnt_mu_ref,   # (Nm,Nu) / (Nu,Nm) bf16 edge counts
                          xu_ref, xm_ref,           # (Nu,Fu) / (Nm,Fm) bf16 features
                          idx_ref,                  # (NLp,2) int32  [user_idx, Nu+movie_idx]
                          w_ref,                    # (Rw, 2H) bf16  packed weight slab
                          b_ref,                    # (8, H)   f32   packed bias slab
                          o_ref):                   # (1, NLp) f32   lane-dense logits row
    f32, bf16 = jnp.float32, jnp.bfloat16
    Nu, Fu = xu_ref.shape
    Nm, Fm = xm_ref.shape
    H = b_ref.shape[1]
    NLp = o_ref.shape[1]

    # static row offsets into the packed weight slab (free ref slices)
    r1 = Fu            # end of W1u_pack
    r2 = r1 + Fm       # end of W1m_pack
    r3 = r2 + H        # end of W2u_pack
    r4 = r3 + H        # end of W2m_pack
    r5 = r4 + H        # end of DEC_pack
    W1u = w_ref[0:r1, :]      # [w1_rates_l | w1_rev_r]   (Fu, 2H)
    W1m = w_ref[r1:r2, :]     # [w1_rev_l   | w1_rates_r] (Fm, 2H)
    W2u = w_ref[r2:r3, :]     # [w2_rates_l | w2_rev_r]   (H , 2H)
    W2m = w_ref[r3:r4, :]     # [w2_rev_l   | w2_rates_r] (H , 2H)
    DEC = w_ref[r4:r5, :]     # [dec_w1u    | dec_w1m]    (H , 2H)
    w2row = w_ref[r5:r5 + 1, :][:, :H]                    # (1 , H)

    B = b_ref[...]
    b1_m, b1_u = B[0:1, :], B[1:2, :]
    b2_m, b2_u = B[2:3, :], B[3:4, :]
    db1 = B[4:5, :]
    db2 = B[5:6, 0:1]

    cnt_um = cnt_um_ref[...]          # (Nm, Nu) bf16, exact integer counts
    cnt_mu = cnt_mu_ref[...]          # (Nu, Nm)
    # f32 mean-normalization epilogue (exact: counts are small integers)
    inv_deg_m = 1.0 / jnp.maximum(jnp.sum(cnt_um.astype(f32), axis=1, keepdims=True), 1.0)
    inv_deg_u = 1.0 / jnp.maximum(jnp.sum(cnt_mu.astype(f32), axis=1, keepdims=True), 1.0)

    xu = xu_ref[...]
    xm = xm_ref[...]

    # ---- encoder layer 1 (lane-packed projections, +relu) ----
    U1 = jnp.dot(xu, W1u, preferred_element_type=f32)     # (Nu, 2H)
    M1 = jnp.dot(xm, W1m, preferred_element_type=f32)     # (Nm, 2H)
    agg_m = jnp.dot(cnt_um, U1[:, :H].astype(bf16), preferred_element_type=f32)
    agg_u = jnp.dot(cnt_mu, M1[:, :H].astype(bf16), preferred_element_type=f32)
    h_m = jnp.maximum(agg_m * inv_deg_m + M1[:, H:] + b1_m, 0.0)   # (Nm, H) f32
    h_u = jnp.maximum(agg_u * inv_deg_u + U1[:, H:] + b1_u, 0.0)   # (Nu, H) f32

    # ---- encoder layer 2 (no activation) ----
    U2 = jnp.dot(h_u.astype(bf16), W2u, preferred_element_type=f32)
    M2 = jnp.dot(h_m.astype(bf16), W2m, preferred_element_type=f32)
    agg_m2 = jnp.dot(cnt_um, U2[:, :H].astype(bf16), preferred_element_type=f32)
    agg_u2 = jnp.dot(cnt_mu, M2[:, :H].astype(bf16), preferred_element_type=f32)
    z_m = agg_m2 * inv_deg_m + M2[:, H:] + b2_m            # (Nm, H) f32
    z_u = agg_u2 * inv_deg_u + U2[:, H:] + b2_u            # (Nu, H) f32

    # ---- decoder: project per-node first, then ONE gather matmul ----
    PU = jnp.dot(z_u.astype(bf16), DEC, preferred_element_type=f32)[:, :H]   # z_u @ dec_w1u
    PM = jnp.dot(z_m.astype(bf16), DEC, preferred_element_type=f32)[:, H:]   # z_m @ dec_w1m
    p_stack = jnp.concatenate([PU, PM], axis=0).astype(bf16)                 # (Nu+Nm, H)

    idx = idx_ref[...]                                          # (NLp, 2) int32, padded -1
    iota = lax.broadcasted_iota(jnp.int32, (NLp, Nu + Nm), 1)
    hit = jnp.logical_or(iota == idx[:, 0:1], iota == idx[:, 1:2])
    sel = jnp.where(hit, 1.0, 0.0).astype(bf16)                 # (NLp, Nu+Nm)
    g = jnp.dot(sel, p_stack, preferred_element_type=f32)       # p_u[row] + p_m[col]
    hdec = jnp.maximum(g + db1, 0.0).astype(bf16)               # (NLp, H)

    # lin2 emitted lane-major: (1,H) x (NLp,H)^T -> (1, NLp)
    logits = lax.dot_general(w2row, hdec,
                             dimension_numbers=(((1,), (1,)), ((), ())),
                             preferred_element_type=f32) + db2
    o_ref[...] = logits.astype(o_ref.dtype)


# ----------------------------------------------------------------------------- wrapper
def _round_up(x, m):
    return ((x + m - 1) // m) * m


def _build_count_adj(edge_index, n_src, n_dst):
    """Dense edge-count matrix: C[i, j] = #edges j->i.  (C @ x_src) / deg == scatter-mean."""
    src, dst = edge_index[0], edge_index[1]
    return jnp.zeros((n_dst, n_src), jnp.float32).at[dst, src].add(1.0)


def prepare_graph(edge_rates, edge_rev, n_users, n_movies):
    """Hoisted out of the jitted forward: call once per (static) graph."""
    cnt_um = _build_count_adj(edge_rates, n_users, n_movies).astype(jnp.bfloat16)
    cnt_mu = _build_count_adj(edge_rev, n_movies, n_users).astype(jnp.bfloat16)
    return cnt_um, cnt_mu


def prepare_labels(edge_label_index, n_users):
    """(n_label,2) -> padded (NLp,2) int32 [user_idx, n_users + movie_idx]; pad rows = -1."""
    n_label = edge_label_index.shape[1]
    nl_pad = _round_up(max(n_label, 1), 128)
    idx = jnp.stack([edge_label_index[0], edge_label_index[1] + n_users], axis=1)
    idx = idx.astype(jnp.int32)
    pad = jnp.full((nl_pad - n_label, 2), -1, jnp.int32)
    return jnp.concatenate([idx, pad], axis=0)


def model_forward(params, cnt_um, cnt_mu, x_user_b, x_movie_b, idx, *, n_label):
    nl_pad = idx.shape[0]
    vmem = pl.BlockSpec(memory_space=pltpu.MemorySpace.VMEM)
    out_row = pl.pallas_call(
        _fused_forward_kernel,
        out_shape=jax.ShapeDtypeStruct((1, nl_pad), jnp.float32),
        in_specs=[vmem] * 7,
        out_specs=vmem,
    )(cnt_um, cnt_mu, x_user_b, x_movie_b, idx, params["w_slab"], params["b_slab"])
    return out_row[0, :n_label]            # matches torch `.view(-1)`


model_forward_jit = jax.jit(model_forward, static_argnames=("n_label",))

# TODO(synk): at real MovieLens scale the dense count matrix / iota selectors should be
# replaced by a tiled (P3) accumulator pipeline with scalar-prefetched edge indices, with
# a 'parallel' leading grid axis so v7x's second TensorCore is used.


# ----------------------------------------------------------------------------- params
def init_params(key, hidden, f_user, f_movie):
    """Weights packed at init: one bf16 slab (lane-packed pairs, sublane-stacked)
    and one f32 (8,H) bias slab.  No per-call casting or slicing."""
    H = hidden
    ks = jax.random.split(key, 16)
    n = lambda k, shape: 0.1 * jax.random.normal(k, shape, jnp.float32)

    # layer 1: ('user','rates','movie')  lin_l: F_u->H (+bias), lin_r: F_m->H
    w1r_l, b1r, w1r_r = n(ks[0], (f_user, H)), n(ks[1], (1, H)), n(ks[2], (f_movie, H))
    # layer 1: ('movie','rev_rates','user')  lin_l: F_m->H (+bias), lin_r: F_u->H
    w1v_l, b1v, w1v_r = n(ks[3], (f_movie, H)), n(ks[4], (1, H)), n(ks[5], (f_user, H))
    # layer 2 (H -> H for both edge types)
    w2r_l, b2r, w2r_r = n(ks[6], (H, H)), n(ks[7], (1, H)), n(ks[8], (H, H))
    w2v_l, b2v, w2v_r = n(ks[9], (H, H)), n(ks[10], (1, H)), n(ks[11], (H, H))
    # decoder: lin1 split into the concat halves; lin2 stored lane-major (1,H)
    dw1u, dw1m, db1 = n(ks[12], (H, H)), n(ks[13], (H, H)), n(ks[14], (1, H))
    dw2, db2 = n(ks[15], (1, H)), jnp.zeros((1, 1), jnp.float32)

    blocks = [
        jnp.concatenate([w1r_l, w1v_r], axis=1),                      # (Fu, 2H)
        jnp.concatenate([w1v_l, w1r_r], axis=1),                      # (Fm, 2H)
        jnp.concatenate([w2r_l, w2v_r], axis=1),                      # (H , 2H)
        jnp.concatenate([w2v_l, w2r_r], axis=1),                      # (H , 2H)
        jnp.concatenate([dw1u, dw1m], axis=1),                        # (H , 2H)
        jnp.concatenate([dw2, jnp.zeros((1, H), jnp.float32)], axis=1),  # (1, 2H)
    ]
    w_slab = jnp.concatenate(blocks, axis=0)
    pad = (-w_slab.shape[0]) % 16                                     # bf16 sublane tile
    if pad:
        w_slab = jnp.concatenate([w_slab, jnp.zeros((pad, 2 * H), jnp.float32)], axis=0)
    w_slab = w_slab.astype(jnp.bfloat16)

    b_slab = jnp.concatenate([
        b1r, b1v, b2r, b2v, db1,
        jnp.concatenate([db2, jnp.zeros((1, H - 1), jnp.float32)], axis=1),
        jnp.zeros((2, H), jnp.float32),
    ], axis=0).astype(jnp.float32)                                    # (8, H)

    return {"w_slab": w_slab, "b_slab": b_slab}


# ----------------------------------------------------------------------------- reference
def reference_forward(params, cnt_um, cnt_mu, xu, xm, idx, n_label):
    """Pure-JAX reference for the module's forward (SAGE mean-agg x2 + EdgeDecoder),
    evaluated at the kernel's bf16-operand / f32-accumulate precision."""
    f32, bf16 = jnp.float32, jnp.bfloat16
    H = params["b_slab"].shape[1]
    Fu, Fm = xu.shape[1], xm.shape[1]
    q = lambda a: a.astype(bf16).astype(f32)

    W = params["w_slab"].astype(f32)
    B = params["b_slab"]
    r1, r2 = Fu, Fu + Fm
    r3, r4, r5 = r2 + H, r2 + 2 * H, r2 + 3 * H
    W1u, W1m, W2u, W2m, DEC = W[:r1], W[r1:r2], W[r2:r3], W[r3:r4], W[r4:r5]
    w2row = W[r5:r5 + 1, :H]
    b1_m, b1_u, b2_m, b2_u, db1 = B[0:1], B[1:2], B[2:3], B[3:4], B[4:5]
    db2 = B[5:6, 0:1]

    A_um, A_mu = cnt_um.astype(f32), cnt_mu.astype(f32)
    inv_m = 1.0 / jnp.maximum(A_um.sum(1, keepdims=True), 1.0)
    inv_u = 1.0 / jnp.maximum(A_mu.sum(1, keepdims=True), 1.0)
    xu_f, xm_f = xu.astype(f32), xm.astype(f32)

    U1, M1 = xu_f @ W1u, xm_f @ W1m
    h_m = jnp.maximum(A_um @ q(U1[:, :H]) * inv_m + M1[:, H:] + b1_m, 0.0)
    h_u = jnp.maximum(A_mu @ q(M1[:, :H]) * inv_u + U1[:, H:] + b1_u, 0.0)
    U2, M2 = q(h_u) @ W2u, q(h_m) @ W2m
    z_m = A_um @ q(U2[:, :H]) * inv_m + M2[:, H:] + b2_m
    z_u = A_mu @ q(M2[:, :H]) * inv_u + U2[:, H:] + b2_u

    PU = (q(z_u) @ DEC)[:, :H]
    PM = (q(z_m) @ DEC)[:, H:]
    p_stack = q(jnp.concatenate([PU, PM], axis=0))
    row, col_off = idx[:n_label, 0], idx[:n_label, 1]
    g = p_stack[row] + p_stack[col_off]                 # == cat-gather + split lin1
    h = jnp.maximum(g + db1, 0.0)
    logits = q(h) @ w2row.T + db2
    return logits.reshape(-1)


# ----------------------------------------------------------------------------- main
if __name__ == "__main__":
    HIDDEN = 32
    N_USERS, N_MOVIES = 16, 24
    F_USER, F_MOVIE = 16, 32
    N_EDGES, N_LABEL = 64, 16

    key = jax.random.PRNGKey(0)
    k_xu, k_xm, k_es, k_ed, k_lr, k_lc, k_p = jax.random.split(key, 7)

    x_user = jax.random.normal(k_xu, (N_USERS, F_USER), jnp.float32)
    x_movie = jax.random.normal(k_xm, (N_MOVIES, F_MOVIE), jnp.float32)

    e_src = jax.random.randint(k_es, (N_EDGES,), 0, N_USERS)
    e_dst = jax.random.randint(k_ed, (N_EDGES,), 0, N_MOVIES)
    edge_rates = jnp.stack([e_src, e_dst])        # ('user','rates','movie')
    edge_rev = jnp.stack([e_dst, e_src])          # ('movie','rev_rates','user')

    lbl_row = jax.random.randint(k_lr, (N_LABEL,), 0, N_USERS)
    lbl_col = jax.random.randint(k_lc, (N_LABEL,), 0, N_MOVIES)
    edge_label_index = jnp.stack([lbl_row, lbl_col])

    params = init_params(k_p, HIDDEN, F_USER, F_MOVIE)

    # one-time prep (hoisted out of the jitted forward)
    cnt_um, cnt_mu = prepare_graph(edge_rates, edge_rev, N_USERS, N_MOVIES)
    idx = prepare_labels(edge_label_index, N_USERS)
    xu_b = x_user.astype(jnp.bfloat16)
    xm_b = x_movie.astype(jnp.bfloat16)

    out = model_forward_jit(params, cnt_um, cnt_mu, xu_b, xm_b, idx, n_label=N_LABEL)
    out = jax.block_until_ready(out)

    ref = reference_forward(params, cnt_um, cnt_mu, xu_b, xm_b, idx, N_LABEL)
    assert out.shape == (N_LABEL,)
    assert jnp.allclose(out, ref, atol=1e-2, rtol=1e-2), (out, ref)

    print("KERNEL_OK")
</pallas_src>

<mosaic_0001>
module attributes {stable_mosaic.version = 11 : i64} {
  func.func @_fused_forward_kernel(%arg0: memref<24x16xbf16, #tpu.memory_space<vmem>>, %arg1: memref<16x24xbf16, #tpu.memory_space<vmem>>, %arg2: memref<16x16xbf16, #tpu.memory_space<vmem>>, %arg3: memref<24x32xbf16, #tpu.memory_space<vmem>>, %arg4: memref<128x2xi32, #tpu.memory_space<vmem>>, %arg5: memref<160x64xbf16, #tpu.memory_space<vmem>>, %arg6: memref<8x32xf32, #tpu.memory_space<vmem>>, %arg7: memref<1x128xf32, #tpu.memory_space<vmem>>) attributes {dimension_semantics = [], scalar_prefetch = 0 : i64, scratch_operands = 0 : i64, tpu.core_type = #tpu.core_type<tc>} {
    %c0 = arith.constant 0 : index
    %c0_0 = arith.constant 0 : index
    %0 = vector.load %arg5[%c0, %c0_0] : memref<160x64xbf16, #tpu.memory_space<vmem>>, vector<16x64xbf16>
    %c16 = arith.constant 16 : index
    %c0_1 = arith.constant 0 : index
    %1 = vector.load %arg5[%c16, %c0_1] : memref<160x64xbf16, #tpu.memory_space<vmem>>, vector<32x64xbf16>
    %c48 = arith.constant 48 : index
    %c0_2 = arith.constant 0 : index
    %2 = vector.load %arg5[%c48, %c0_2] : memref<160x64xbf16, #tpu.memory_space<vmem>>, vector<32x64xbf16>
    %c80 = arith.constant 80 : index
    %c0_3 = arith.constant 0 : index
    %3 = vector.load %arg5[%c80, %c0_3] : memref<160x64xbf16, #tpu.memory_space<vmem>>, vector<32x64xbf16>
    %c112 = arith.constant 112 : index
    %c0_4 = arith.constant 0 : index
    %4 = vector.load %arg5[%c112, %c0_4] : memref<160x64xbf16, #tpu.memory_space<vmem>>, vector<32x64xbf16>
    %c144 = arith.constant 144 : index
    %c0_5 = arith.constant 0 : index
    %5 = vector.load %arg5[%c144, %c0_5] : memref<160x64xbf16, #tpu.memory_space<vmem>>, vector<1x64xbf16>
    %6 = vector.extract_strided_slice %5 {offsets = [0, 0], sizes = [1, 32], strides = [1, 1]} : vector<1x64xbf16> to vector<1x32xbf16>
    %c0_6 = arith.constant 0 : index
    %c0_7 = arith.constant 0 : index
    %7 = vector.load %arg6[%c0_6, %c0_7] : memref<8x32xf32, #tpu.memory_space<vmem>>, vector<8x32xf32>
    %8 = vector.extract_strided_slice %7 {offsets = [0, 0], sizes = [1, 32], strides = [1, 1]} : vector<8x32xf32> to vector<1x32xf32>
    %9 = vector.extract_strided_slice %7 {offsets = [1, 0], sizes = [1, 32], strides = [1, 1]} : vector<8x32xf32> to vector<1x32xf32>
    %10 = vector.extract_strided_slice %7 {offsets = [2, 0], sizes = [1, 32], strides = [1, 1]} : vector<8x32xf32> to vector<1x32xf32>
    %11 = vector.extract_strided_slice %7 {offsets = [3, 0], sizes = [1, 32], strides = [1, 1]} : vector<8x32xf32> to vector<1x32xf32>
    %12 = vector.extract_strided_slice %7 {offsets = [4, 0], sizes = [1, 32], strides = [1, 1]} : vector<8x32xf32> to vector<1x32xf32>
    %13 = vector.extract_strided_slice %7 {offsets = [5, 0], sizes = [1, 1], strides = [1, 1]} : vector<8x32xf32> to vector<1x1xf32>
    %c0_8 = arith.constant 0 : index
    %c0_9 = arith.constant 0 : index
    %14 = vector.load %arg0[%c0_8, %c0_9] : memref<24x16xbf16, #tpu.memory_space<vmem>>, vector<24x16xbf16>
    %c0_10 = arith.constant 0 : index
    %c0_11 = arith.constant 0 : index
    %15 = vector.load %arg1[%c0_10, %c0_11] : memref<16x24xbf16, #tpu.memory_space<vmem>>, vector<16x24xbf16>
    %16 = arith.extf %14 : vector<24x16xbf16> to vector<24x16xf32>
    %cst = arith.constant dense<0.000000e+00> : vector<24xf32>
    %17 = vector.multi_reduction <add>, %16, %cst [1] : vector<24x16xf32> to vector<24xf32>
    %18 = vector.shape_cast %17 : vector<24xf32> to vector<24x1xf32>
    %cst_12 = arith.constant 1.000000e+00 : f32
    %19 = vector.broadcast %cst_12 : f32 to vector<24x1xf32>
    %20 = arith.maximumf %18, %19 : vector<24x1xf32>
    %cst_13 = arith.constant 1.000000e+00 : f32
    %21 = vector.broadcast %cst_13 : f32 to vector<24x1xf32>
    %22 = arith.divf %21, %20 : vector<24x1xf32>
    %23 = arith.extf %15 : vector<16x24xbf16> to vector<16x24xf32>
    %cst_14 = arith.constant dense<0.000000e+00> : vector<16xf32>
    %24 = vector.multi_reduction <add>, %23, %cst_14 [1] : vector<16x24xf32> to vector<16xf32>
    %25 = vector.shape_cast %24 : vector<16xf32> to vector<16x1xf32>
    %cst_15 = arith.constant 1.000000e+00 : f32
    %26 = vector.broadcast %cst_15 : f32 to vector<16x1xf32>
    %27 = arith.maximumf %25, %26 : vector<16x1xf32>
    %cst_16 = arith.constant 1.000000e+00 : f32
    %28 = vector.broadcast %cst_16 : f32 to vector<16x1xf32>
    %29 = arith.divf %28, %27 : vector<16x1xf32>
    %c0_17 = arith.constant 0 : index
    %c0_18 = arith.constant 0 : index
    %30 = vector.load %arg2[%c0_17, %c0_18] : memref<16x16xbf16, #tpu.memory_space<vmem>>, vector<16x16xbf16>
    %c0_19 = arith.constant 0 : index
    %c0_20 = arith.constant 0 : index
    %31 = vector.load %arg3[%c0_19, %c0_20] : memref<24x32xbf16, #tpu.memory_space<vmem>>, vector<24x32xbf16>
    %cst_21 = arith.constant dense<0.000000e+00> : vector<16x64xf32>
    %32 = tpu.matmul %30, %0, %cst_21 {dimension_numbers = #tpu.dot_dimension_numbers<[1], [0], [0], [1], [0, 0, 1, 1], [], []>} : vector<16x16xbf16>, vector<16x64xbf16>, vector<16x64xf32> -> vector<16x64xf32>
    %cst_22 = arith.constant dense<0.000000e+00> : vector<24x64xf32>
    %33 = tpu.matmul %31, %1, %cst_22 {dimension_numbers = #tpu.dot_dimension_numbers<[1], [0], [0], [1], [0, 0, 1, 1], [], []>} : vector<24x32xbf16>, vector<32x64xbf16>, vector<24x64xf32> -> vector<24x64xf32>
    %34 = vector.extract_strided_slice %32 {offsets = [0, 0], sizes = [16, 32], strides = [1, 1]} : vector<16x64xf32> to vector<16x32xf32>
    %35 = arith.truncf %34 : vector<16x32xf32> to vector<16x32xbf16>
    %cst_23 = arith.constant dense<0.000000e+00> : vector<24x32xf32>
    %36 = tpu.matmul %14, %35, %cst_23 {dimension_numbers = #tpu.dot_dimension_numbers<[1], [0], [0], [1], [0, 0, 1, 1], [], []>} : vector<24x16xbf16>, vector<16x32xbf16>, vector<24x32xf32> -> vector<24x32xf32>
    %37 = vector.extract_strided_slice %33 {offsets = [0, 0], sizes = [24, 32], strides = [1, 1]} : vector<24x64xf32> to vector<24x32xf32>
    %38 = arith.truncf %37 : vector<24x32xf32> to vector<24x32xbf16>
    %cst_24 = arith.constant dense<0.000000e+00> : vector<16x32xf32>
    %39 = tpu.matmul %15, %38, %cst_24 {dimension_numbers = #tpu.dot_dimension_numbers<[1], [0], [0], [1], [0, 0, 1, 1], [], []>} : vector<16x24xbf16>, vector<24x32xbf16>, vector<16x32xf32> -> vector<16x32xf32>
    %40 = vector.broadcast %22 : vector<24x1xf32> to vector<24x32xf32>
    %41 = arith.mulf %36, %40 : vector<24x32xf32>
    %42 = vector.extract_strided_slice %33 {offsets = [0, 32], sizes = [24, 32], strides = [1, 1]} : vector<24x64xf32> to vector<24x32xf32>
    %43 = arith.addf %41, %42 : vector<24x32xf32>
    %44 = vector.broadcast %8 : vector<1x32xf32> to vector<24x32xf32>
    %45 = arith.addf %43, %44 : vector<24x32xf32>
    %cst_25 = arith.constant 0.000000e+00 : f32
    %46 = vector.broadcast %cst_25 : f32 to vector<24x32xf32>
    %47 = arith.maximumf %45, %46 : vector<24x32xf32>
    %48 = vector.broadcast %29 : vector<16x1xf32> to vector<16x32xf32>
    %49 = arith.mulf %39, %48 : vector<16x32xf32>
    %50 = vector.extract_strided_slice %32 {offsets = [0, 32], sizes = [16, 32], strides = [1, 1]} : vector<16x64xf32> to vector<16x32xf32>
    %51 = arith.addf %49, %50 : vector<16x32xf32>
    %52 = vector.broadcast %9 : vector<1x32xf32> to vector<16x32xf32>
    %53 = arith.addf %51, %52 : vector<16x32xf32>
    %cst_26 = arith.constant 0.000000e+00 : f32
    %54 = vector.broadcast %cst_26 : f32 to vector<16x32xf32>
    %55 = arith.maximumf %53, %54 : vector<16x32xf32>
    %56 = arith.truncf %55 : vector<16x32xf32> to vector<16x32xbf16>
    %cst_27 = arith.constant dense<0.000000e+00> : vector<16x64xf32>
    %57 = tpu.matmul %56, %2, %cst_27 {dimension_numbers = #tpu.dot_dimension_numbers<[1], [0], [0], [1], [0, 0, 1, 1], [], []>} : vector<16x32xbf16>, vector<32x64xbf16>, vector<16x64xf32> -> vector<16x64xf32>
    %58 = arith.truncf %47 : vector<24x32xf32> to vector<24x32xbf16>
    %cst_28 = arith.constant dense<0.000000e+00> : vector<24x64xf32>
    %59 = tpu.matmul %58, %3, %cst_28 {dimension_numbers = #tpu.dot_dimension_numbers<[1], [0], [0], [1], [0, 0, 1, 1], [], []>} : vector<24x32xbf16>, vector<32x64xbf16>, vector<24x64xf32> -> vector<24x64xf32>
    %60 = vector.extract_strided_slice %57 {offsets = [0, 0], sizes = [16, 32], strides = [1, 1]} : vector<16x64xf32> to vector<16x32xf32>
    %61 = arith.truncf %60 : vector<16x32xf32> to vector<16x32xbf16>
    %cst_29 = arith.constant dense<0.000000e+00> : vector<24x32xf32>
    %62 = tpu.matmul %14, %61, %cst_29 {dimension_numbers = #tpu.dot_dimension_numbers<[1], [0], [0], [1], [0, 0, 1, 1], [], []>} : vector<24x16xbf16>, vector<16x32xbf16>, vector<24x32xf32> -> vector<24x32xf32>
    %63 = vector.extract_strided_slice %59 {offsets = [0, 0], sizes = [24, 32], strides = [1, 1]} : vector<24x64xf32> to vector<24x32xf32>
    %64 = arith.truncf %63 : vector<24x32xf32> to vector<24x32xbf16>
    %cst_30 = arith.constant dense<0.000000e+00> : vector<16x32xf32>
    %65 = tpu.matmul %15, %64, %cst_30 {dimension_numbers = #tpu.dot_dimension_numbers<[1], [0], [0], [1], [0, 0, 1, 1], [], []>} : vector<16x24xbf16>, vector<24x32xbf16>, vector<16x32xf32> -> vector<16x32xf32>
    %66 = vector.broadcast %22 : vector<24x1xf32> to vector<24x32xf32>
    %67 = arith.mulf %62, %66 : vector<24x32xf32>
    %68 = vector.extract_strided_slice %59 {offsets = [0, 32], sizes = [24, 32], strides = [1, 1]} : vector<24x64xf32> to vector<24x32xf32>
    %69 = arith.addf %67, %68 : vector<24x32xf32>
    %70 = vector.broadcast %10 : vector<1x32xf32> to vector<24x32xf32>
    %71 = arith.addf %69, %70 : vector<24x32xf32>
    %72 = vector.broadcast %29 : vector<16x1xf32> to vector<16x32xf32>
    %73 = arith.mulf %65, %72 : vector<16x32xf32>
    %74 = vector.extract_strided_slice %57 {offsets = [0, 32], sizes = [16, 32], strides = [1, 1]} : vector<16x64xf32> to vector<16x32xf32>
    %75 = arith.addf %73, %74 : vector<16x32xf32>
    %76 = vector.broadcast %11 : vector<1x32xf32> to vector<16x32xf32>
    %77 = arith.addf %75, %76 : vector<16x32xf32>
    %78 = arith.truncf %77 : vector<16x32xf32> to vector<16x32xbf16>
    %cst_31 = arith.constant dense<0.000000e+00> : vector<16x64xf32>
    %79 = tpu.matmul %78, %4, %cst_31 {dimension_numbers = #tpu.dot_dimension_numbers<[1], [0], [0], [1], [0, 0, 1, 1], [], []>} : vector<16x32xbf16>, vector<32x64xbf16>, vector<16x64xf32> -> vector<16x64xf32>
    %80 = vector.extract_strided_slice %79 {offsets = [0, 0], sizes = [16, 32], strides = [1, 1]} : vector<16x64xf32> to vector<16x32xf32>
    %81 = arith.truncf %71 : vector<24x32xf32> to vector<24x32xbf16>
    %cst_32 = arith.constant dense<0.000000e+00> : vector<24x64xf32>
    %82 = tpu.matmul %81, %4, %cst_32 {dimension_numbers = #tpu.dot_dimension_numbers<[1], [0], [0], [1], [0, 0, 1, 1], [], []>} : vector<24x32xbf16>, vector<32x64xbf16>, vector<24x64xf32> -> vector<24x64xf32>
    %83 = vector.extract_strided_slice %82 {offsets = [0, 32], sizes = [24, 32], strides = [1, 1]} : vector<24x64xf32> to vector<24x32xf32>
    %84 = tpu.concatenate %80, %83 in 0 : vector<16x32xf32>, vector<24x32xf32> -> vector<40x32xf32>
    %85 = arith.truncf %84 : vector<40x32xf32> to vector<40x32xbf16>
    %c0_33 = arith.constant 0 : index
    %c0_34 = arith.constant 0 : index
    %86 = vector.load %arg4[%c0_33, %c0_34] : memref<128x2xi32, #tpu.memory_space<vmem>>, vector<128x2xi32>
    %87 = tpu.iota {dimensions = array<i32: 1>} : vector<128x40xi32>
    %88 = vector.extract_strided_slice %86 {offsets = [0, 0], sizes = [128, 1], strides = [1, 1]} : vector<128x2xi32> to vector<128x1xi32>
    %89 = vector.broadcast %88 : vector<128x1xi32> to vector<128x40xi32>
    %90 = arith.cmpi eq, %87, %89 : vector<128x40xi32>
    %91 = vector.extract_strided_slice %86 {offsets = [0, 1], sizes = [128, 1], strides = [1, 1]} : vector<128x2xi32> to vector<128x1xi32>
    %92 = vector.broadcast %91 : vector<128x1xi32> to vector<128x40xi32>
    %93 = arith.cmpi eq, %87, %92 : vector<128x40xi32>
    %94 = arith.ori %90, %93 : vector<128x40xi1>
    %cst_35 = arith.constant 1.000000e+00 : f32
    %cst_36 = arith.constant 0.000000e+00 : f32
    %95 = vector.broadcast %cst_35 : f32 to vector<128x40xf32>
    %96 = vector.broadcast %cst_36 : f32 to vector<128x40xf32>
    %97 = arith.select %94, %95, %96 : vector<128x40xi1>, vector<128x40xf32>
    %98 = arith.truncf %97 : vector<128x40xf32> to vector<128x40xbf16>
    %cst_37 = arith.constant dense<0.000000e+00> : vector<128x32xf32>
    %99 = tpu.matmul %98, %85, %cst_37 {dimension_numbers = #tpu.dot_dimension_numbers<[1], [0], [0], [1], [0, 0, 1, 1], [], []>} : vector<128x40xbf16>, vector<40x32xbf16>, vector<128x32xf32> -> vector<128x32xf32>
    %100 = vector.broadcast %12 : vector<1x32xf32> to vector<128x32xf32>
    %101 = arith.addf %99, %100 : vector<128x32xf32>
    %cst_38 = arith.constant 0.000000e+00 : f32
    %102 = vector.broadcast %cst_38 : f32 to vector<128x32xf32>
    %103 = arith.maximumf %101, %102 : vector<128x32xf32>
    %104 = arith.truncf %103 : vector<128x32xf32> to vector<128x32xbf16>
    %cst_39 = arith.constant dense<0.000000e+00> : vector<1x128xf32>
    %105 = tpu.matmul %6, %104, %cst_39 {dimension_numbers = #tpu.dot_dimension_numbers<[1], [1], [0], [0], [0, 0, 1, 0], [], []>} : vector<1x32xbf16>, vector<128x32xbf16>, vector<1x128xf32> -> vector<1x128xf32>
    %106 = vector.broadcast %13 : vector<1x1xf32> to vector<1x128xf32>
    %107 = arith.addf %105, %106 : vector<1x128xf32>
    %c0_40 = arith.constant 0 : index
    %c0_41 = arith.constant 0 : index
    %108 = vector.load %arg7[%c0_40, %c0_41] : memref<1x128xf32, #tpu.memory_space<vmem>>, vector<1x128xf32>
    tpu.vector_store %arg7[%c0_40, %c0_41], %107 {strides = array<i32>} : memref<1x128xf32, #tpu.memory_space<vmem>>, vector<1x128xf32>,
    return
  }
}

</mosaic_0001>

<bundles_post_ra>
// kernel: model_forward.1
= control target key start
LH: loop header
LB: loop body
LE: loop exit
PB: predicated region body
PF: predicated region fallthrough
CT: control target
= control target key end

     0   :  { %v1461_v0 = vmov 0.0   ;;  %vm1462_vm0 = vmmov 0   ;;  %vm55_vm1 = vcmask 130048   ;;  %vm169_vm2 = vcmask 261120   ;;  %s1852_s5 = inlined_call_operand.vmem [shape: bf16[160,64], index: 5, kind: input, shape index: {}]   ;;  %s1853_s2 = inlined_call_operand.vmem [shape: bf16[16,16], index: 2, kind: input, shape index: {}]   ;;  %s1854_s3 = inlined_call_operand.vmem [shape: bf16[24,32], index: 3, kind: input, shape index: {}]   ;;  %s1855_s1 = inlined_call_operand.vmem [shape: bf16[16,24], index: 1, kind: input, shape index: {}]   ;;  %s1856_s0 = inlined_call_operand.vmem [shape: bf16[24,16], index: 0, kind: input, shape index: {}]   ;;  %s1857_s6 = inlined_call_operand.vmem [shape: f32[8,32], index: 6, kind: input, shape index: {}]   ;;  %s1858_s4 = inlined_call_operand.vmem [shape: s32[128,2], index: 4, kind: input, shape index: {}]   ;;  %s1859_s7 = inlined_call_operand.vmem [shape: f32[1,128], index: 7, kind: output, shape index: {}]  }
   0x1   :  { %1289 = vmatprep.subr.bf16.mxu0 %v1461_v0  ;;  %v1434_v1 = vld [vmem:[%s1852_s5] sm:$0xff]   ;;  %1291 = vmatprep.mubr.msk.bf16.mxu0 %vm1462_vm0, %v1461_v0  ;;  %v1436_v3 = vld [vmem:[%s1852_s5 + $0x10] sm:$0xff]   ;;  %v1437_v4 = vld [vmem:[%s1852_s5 + $0x8] sm:$0xff]   ;;  %vm76_vm3 = vcmask 195584   ;;  %vm297_vm4 = vcmask 1043456   ;;  %v360_v49 = vlaneseq  ;;  %vm971_vm11 = vcmask 326656  }
   0x2   :  { %v1435_v2 = vld [vmem:[%s1853_s2] sm:$0xff]   ;;  %1290 = vmatpush3.bf16.msra.mxu0 %v1434_v1  ;;  %v1439_v10 = vld [vmem:[%s1854_s3 + $0x8] ss:$0 sps:$4 sm:$0xff]   ;;  %v1443_v33 = vld [vmem:[%s1852_s5 + $0x30] sm:$0xff]  }
   0x3   :  { %1295 = vmatprep.subr.bf16.mxu0 %v1436_v3  ;;  %v1438_v5 = vld [vmem:[%s1854_s3] sm:$0xff]   ;;  %v49_v14 = vld [vmem:[%s1856_s0 + $0x8] sm:$0xf]  ;;  %s1463_s3 = smov 96   ;;  %1325 = vmatprep.subr.bf16.mxu1 %v1443_v33  ;;  %v1446_v36 = vld [vmem:[%s1852_s5 + $0x18] sm:$0xff]   ;;  %v1588_v51 = vshrl.u32 %v360_v49, 7 }
   0x4   :  { %v1528_v6 = vld [vmem:[%s1855_s1] sm:$0xff]   ;;  %v54_v16 = vunpack.c.l.bf16 %v49_v14  ;;  %v1554_v23 = vcombine.low %v49_v14, %v49_v14  ;;  %1326 = vmatpush3.bf16.msra.mxu1 %v1443_v33  ;;  %v1444_v34 = vld [vmem:[%s1852_s5 + $0x28] sm:$0xff]  }
   0x5   :  { %1292 = vmatmul.mubr.msk.bf16.vlgmr.msra.gmra.mxu0 %vm55_vm1, %v1435_v2  ;;  %v74_v7 = vunpack.c.l.bf16 %v1528_v6  ;;  %v75_v8 = vunpack.c.h.bf16 %v1528_v6  ;;  %v1536_v9 = vld [vmem:[%s1856_s0] sm:$0xff]   ;;  %1327 = vmatprep.subr.bf16.mxu1 %v1444_v34  ;;  %v362_v56 = vsub.s32 0, %v1588_v51 }
   0x6   :  { %1296 = vmatpush3.bf16.msra.mxu0 %v1436_v3  ;;  %1299 = vmatprep.mubr.msk.bf16.mxu0 %vm169_vm2, %v1438_v5  ;;  %v52_v13 = vunpack.c.l.bf16 %v1536_v9  ;;  %v62_v17 = vsel %vm55_vm1, %v54_v16, 0.0  ;;  %v53_v31 = vunpack.c.h.bf16 %v1536_v9  ;;  %v1445_v35 = vld [vmem:[%s1852_s5 + $0x20] sm:$0xff]  }
   0x7   :  { %1297 = vmatprep.subr.bf16.mxu0 %v1437_v4  ;;  %v77_v11 = vsel %vm76_vm3, %v74_v7, 0.0  ;;  %v80_v12 = vsel %vm76_vm3, %v75_v8, 0.0  ;;  %v1598_v57 = vld [vmem:[%s1857_s6] sm:$0xff] }
   0x8   :  { %78 = vadd.xlane.f32.xlu0 %v77_v11  ;;  %v56_v15 = vsel %vm55_vm1, %v52_v13, 0.0  ;;  %v59_v32 = vsel %vm55_vm1, %v53_v31, 0.0  ;;  %1328 = vmatpush3.bf16.msra.mxu1 %v1444_v34  ;;  %v363_v1 = vrot.slane %v1598_v57, %v362_v56  ;;  %v783_v56 = vld [vmem:[%s1858_s4 + $0x10] sm:$0xff] }
   0x9   :  { %1339 = vmatprep.subr.bf16.mxu1 %v1461_v0 }
   0xa   :  { %1298 = vmatpush3.bf16.msra.mxu0 %v1437_v4 }
   0xc   :  { %81 = vadd.xlane.f32.xlu0 %v80_v12 }
   0xd   :  { %1300 = vmatmul.mubr.msk.bf16.vlgmr.msra.gmra.mxu0 %vm169_vm2, %v1439_v10  ;;  %v384_v10 = vsub.s32 1, %v1588_v51 }
   0xe   :  { %1305 = vmatprep.mubr.msk.bf16.mxu0 %vm55_vm1, %v1536_v9 }
  0x10   :  { %57 = vadd.xlane.f32.xlu0 %v56_v15 }
  0x14   :  { %63 = vadd.xlane.f32.xlu0 %v62_v17 }
  0x91   :  { %v79_v37 = vpop.xlane.xlu0 %78 }
  0x92   :  { %v83_v47 = vmax.f32 %v79_v37, 1.0 }
  0x95   :  { %v82_v38 = vpop.xlane.xlu0 %81 }
  0x96   :  { %v84_v50 = vmax.f32 %v82_v38, 1.0 }
  0x99   :  { %v58_v40 = vpop.xlane.xlu0 %57 }
  0x9a   :  { %v65_v44 = vmax.f32 %v58_v40, 1.0 }
  0x9d   :  { %v64_v42 = vpop.xlane.xlu0 %63 }
  0x9e   :  { %v67_v43 = vmax.f32 %v64_v42, 1.0 }
  0xa0   :  { %1451 = vrcp.f32 %v67_v43 }
  0xa1   :  { %1453 = vrcp.f32 %v65_v44 }
  0xad   :  { %v1590_v53 = vpop.eup %1451 }
  0xae   :  { %v1592_v54 = vpop.eup %1453 }
  0xc5   :  { %v142_v18 = vpop.f32.mrf.mxu0 }
  0xc6   :  { %374 = vrot.lane.b32.xlu1 %v142_v18, %s1463_s3 }
  0xc7   :  { %v1293_v19 = vpop.f32.mrf.mxu0 }
  0xc9   :  { %v145_v20 = vpop.f32.mrf.mxu0 }
  0xca   :  { %v224_v21 = vpack.c.bf16 %v145_v20, %v142_v18  ;;  %376 = vrot.lane.b32.xlu1 %v145_v20, %s1463_s3  ;;  %v385_v20 = vrot.slane %v1598_v57, %v384_v10 }
  0xcb   :  { %v1294_v22 = vpop.f32.mrf.mxu0 }
  0xcc   :  { %1303 = vmatprep.subr.bf16.mxu0 %v224_v21 }
  0xcd   :  { %v1301_v24 = vpop.f32.mrf.mxu0  ;;  %1304 = vmatpush3.bf16.msra.mxu0 %v224_v21 }
  0xce   :  { %v288_v25 = vpack.c.bf16 %v1301_v24, %v1301_v24  ;;  %1309 = vmatprep.subr.bf16.mxu0 %v1461_v0 }
  0xcf   :  { %v210_v26 = vpop.f32.mrf.mxu0 }
  0xd0   :  { %1306 = vmatmul.mubr.msk.bf16.vlgmr.msra.gmra.mxu0 %vm55_vm1, %v1554_v23  ;;  %348 = vrot.lane.b32.xlu0 %v210_v26, %s1463_s3  ;;  %v299_v27 = vsel %vm297_vm4, %v288_v25, 0 }
  0xd1   :  { %v1302_v28 = vpop.f32.mrf.mxu0  ;;  %1310 = vmatpush3.bf16.msra.mxu0 %v299_v27  ;;  %1313 = vmatprep.mubr.msk.bf16.mxu0 %vm1462_vm0, %v1461_v0 }
  0xd2   :  { %1311 = vmatprep.subr.bf16.mxu0 %v1461_v0 }
  0xd3   :  { %v213_v29 = vpop.f32.mrf.mxu0 }
  0xd4   :  { %v287_v30 = vpack.c.bf16 %v213_v29, %v210_v26  ;;  %350 = vrot.lane.b32.xlu0 %v213_v29, %s1463_s3 }
  0xd6   :  { %1312 = vmatpush3.bf16.msra.mxu0 %v287_v30 }
  0xd7   :  { %1317 = vmatprep.subr.bf16.mxu0 %v1461_v0 }
  0xd8   :  { %352 = vrot.lane.b32.xlu0 %v1301_v24, %s1463_s3 }
  0xd9   :  { %1314 = vmatmul.mubr.msk.bf16.vlgmr.msra.gmra.mxu0 %vm76_vm3, %v1528_v6 }
  0xda   :  { %1321 = vmatprep.mubr.msk.bf16.mxu0 %vm1462_vm0, %v1461_v0  ;;  %1318 = vmatpush3.bf16.msra.mxu0 %v1445_v35 }
  0xdb   :  { %1319 = vmatprep.subr.bf16.mxu0 %v1461_v0 }
  0xde   :  { %1320 = vmatpush3.bf16.msra.mxu0 %v1446_v36 }
  0xee   :  { %60 = vadd.xlane.f32.xlu1 %v59_v32 }
 0x138   :  { %v375_v39 = vpop.permute.xlu1 %374 }
 0x13c   :  { %v377_v41 = vpop.permute.xlu1 %376 }
 0x142   :  { %v349_v48 = vpop.permute.xlu0 %348 }
 0x146   :  { %v351_v52 = vpop.permute.xlu0 %350 }
 0x14a   :  { %v353_v60 = vpop.permute.xlu0 %352 }
 0x177   :  { %v61_v45 = vpop.xlane.xlu1 %60 }
 0x178   :  { %v66_v46 = vmax.f32 %v61_v45, 1.0 }
 0x17a   :  { %1455 = vrcp.f32 %v66_v46  ;;  %v1447_v46 = vld [vmem:[%s1852_s5 + $0x40] sm:$0xff]  }
 0x17b   :  { %1457 = vrcp.f32 %v83_v47  ;;  %v782_v47 = vld [vmem:[%s1858_s4 + $0x8] sm:$0xff] }
 0x17c   :  { %1459 = vrcp.f32 %v84_v50  ;;  %v785_v50 = vld [vmem:[%s1858_s4 + $0x20] sm:$0xff] }
 0x187   :  { %v1602_v62 = vpop.eup %1455 }
 0x188   :  { %v1605_v5 = vpop.eup %1457 }
 0x189   :  { %v1610_v15 = vpop.eup %1459 }
 0x190   :  { %v1307_v55 = vpop.f32.mrf.mxu0 }
 0x191   :  { %v344_v58 = vmul.f32 %v1590_v53, %v1307_v55  ;;  %v789_v55 = vld [vmem:[%s1858_s4 + $0x40] sm:$0xff] }
 0x192   :  { %v273_v59 = vpop.f32.mrf.mxu0 }
 0x193   :  { %v342_v61 = vmul.f32 %v1592_v54, %v273_v59  ;;  %v359_v63 = vadd.f32 %v353_v60, %v344_v58  ;;  %v1664_v58 = vld [vmem:[%s1858_s4 + $0x60] sm:$0xff]  ;;  %v784_v59 = vld [vmem:[%s1858_s4 + $0x18] sm:$0xff]  ;;  %v786_v60 = vld [vmem:[%s1858_s4 + $0x28] sm:$0xff] }
 0x194   :  { %v1308_v2 = vpop.f32.mrf.mxu0 }
 0x195   :  { %v357_v3 = vadd.f32 %v349_v48, %v342_v61  ;;  %v366_v8 = vadd.f32 %v363_v1, %v359_v63  ;;  %v1465_v48 = vmov 0   ;;  %v788_v61 = vld [vmem:[%s1858_s4 + $0x38] sm:$0xff]  ;;  %v787_v63 = vld [vmem:[%s1858_s4 + $0x30] sm:$0xff] }
 0x196   :  { %v276_v4 = vpop.f32.mrf.mxu0  ;;  %1411 = vset.pattern.permute.xlu1 %v1465_v48  ;;  %v791_v2 = vld [vmem:[%s1858_s4 + $0x50] sm:$0xff] }
 0x197   :  { %v343_v7 = vmul.f32 %v1602_v62, %v276_v4  ;;  %v364_v13 = vadd.f32 %v363_v1, %v357_v3  ;;  %v369_v18 = vmax.f32 %v366_v8, 0.0 }
 0x199   :  { %v358_v11 = vadd.f32 %v351_v52, %v343_v7  ;;  %v335_v12 = vpop.f32.mrf.mxu0  ;;  %v367_v22 = vmax.f32 %v364_v13, 0.0  ;;  %v448_v28 = vpack.c.bf16 %v369_v18, %v369_v18  ;;  %v781_v52 = vld [vmem:[%s1858_s4] sm:$0xff] }
 0x19a   :  { %v370_v14 = vmul.f32 %v1605_v5, %v335_v12 }
 0x19b   :  { %v1315_v16 = vpop.f32.mrf.mxu0  ;;  %v365_v17 = vadd.f32 %v363_v1, %v358_v11  ;;  %v790_v1 = vld [vmem:[%s1858_s4 + $0x48] sm:$0xff]  ;;  %v649_v11 = vsub.s32 3, %v1588_v51 }
 0x19c   :  { %v380_v19 = vadd.f32 %v375_v39, %v370_v14 }
 0x19d   :  { %v338_v21 = vpop.f32.mrf.mxu0  ;;  %v368_v24 = vmax.f32 %v365_v17, 0.0  ;;  %v650_v16 = vrot.slane %v1598_v57, %v649_v11 }
 0x19e   :  { %v371_v25 = vmul.f32 %v1610_v15, %v338_v21  ;;  %v386_v29 = vadd.f32 %v385_v20, %v380_v19 }
 0x19f   :  { %v1316_v26 = vpop.f32.mrf.mxu0  ;;  %v447_v27 = vpack.c.bf16 %v368_v24, %v367_v22  ;;  %v630_v24 = vsub.s32 2, %v1588_v51 }
 0x1a0   :  { %v381_v30 = vadd.f32 %v377_v41, %v371_v25  ;;  %v388_v32 = vmax.f32 %v386_v29, 0.0 }
 0x1a1   :  { %1329 = vmatprep.mubr.msk.bf16.mxu1 %vm169_vm2, %v447_v27 }
 0x1a2   :  { %v387_v31 = vadd.f32 %v385_v20, %v381_v30  ;;  %1330 = vmatmul.mubr.msk.bf16.vlgmr.msra.gmra.mxu1 %vm169_vm2, %v448_v28 }
 0x1a3   :  { %1343 = vmatprep.mubr.msk.bf16.mxu1 %vm1462_vm0, %v1461_v0 }
 0x1a4   :  { %v389_v33 = vmax.f32 %v387_v31, 0.0 }
 0x1a6   :  { %v390_v34 = vpack.c.bf16 %v389_v33, %v388_v32  ;;  %v631_v32 = vrot.slane %v1598_v57, %v630_v24 }
 0x1a8   :  { %1322 = vmatmul.mubr.msk.bf16.vlgmr.msra.gmra.mxu0 %vm169_vm2, %v390_v34 }
 0x1a9   :  { %1335 = vmatprep.mubr.msk.bf16.mxu0 %vm55_vm1, %v1536_v9 }
 0x262   :  { %v1331_v35 = vpop.f32.mrf.mxu1 }
 0x263   :  { %v565_v36 = vpack.c.bf16 %v1331_v35, %v1331_v35 }
 0x264   :  { %v501_v37 = vpop.f32.mrf.mxu1 }
 0x265   :  { %616 = vrot.lane.b32.xlu1 %v501_v37, %s1463_s3  ;;  %v567_v38 = vsel %vm297_vm4, %v565_v36, 0 }
 0x266   :  { %v1332_v39 = vpop.f32.mrf.mxu1  ;;  %1340 = vmatpush3.bf16.msra.mxu1 %v567_v38 }
 0x267   :  { %1341 = vmatprep.subr.bf16.mxu1 %v1461_v0  ;;  %v792_v39 = vld [vmem:[%s1858_s4 + $0x58] sm:$0xff] }
 0x268   :  { %v440_v40 = vpop.f32.mrf.mxu0  ;;  %v504_v41 = vpop.f32.mrf.mxu1 }
 0x269   :  { %v564_v42 = vpack.c.bf16 %v504_v41, %v501_v37  ;;  %618 = vrot.lane.b32.xlu0 %v504_v41, %s1463_s3  ;;  %803 = vperm.xlu1 %1411, %v782_v47  }
 0x26a   :  { %v1323_v43 = vpop.f32.mrf.mxu0 }
 0x26b   :  { %1342 = vmatpush3.bf16.msra.mxu1 %v564_v42  ;;  %v1721_v42 = vand.u32 127, %v360_v49 }
 0x26c   :  { %v443_v44 = vpop.f32.mrf.mxu0  ;;  %1355 = vmatprep.subr.bf16.mxu1 %v1447_v46 }
 0x26d   :  { %v515_v9 = vpack.c.bf16 %v443_v44, %v440_v40  ;;  %620 = vrot.lane.b32.xlu0 %v1331_v35, %s1463_s3 }
 0x26e   :  { %v1324_v45 = vpop.f32.mrf.mxu0  ;;  %1344 = vmatmul.mubr.msk.bf16.vlgmr.msra.gmra.mxu1 %vm76_vm3, %v1528_v6  ;;  %v1448_v6 = vld [vmem:[%s1852_s5 + $0x38] sm:$0xff]  }
 0x26f   :  { %1333 = vmatprep.subr.bf16.mxu0 %v515_v9  ;;  %1356 = vmatpush3.bf16.msra.mxu1 %v1447_v46 }
 0x270   :  { %1334 = vmatpush3.bf16.msra.mxu0 %v515_v9  ;;  %1357 = vmatprep.subr.bf16.mxu1 %v1448_v6 }
 0x271   :  { %639 = vrot.lane.b32.xlu0 %v440_v40, %s1463_s3  ;;  %1347 = vmatprep.subr.bf16.mxu0 %v1461_v0 }
 0x273   :  { %1336 = vmatmul.mubr.msk.bf16.vlgmr.msra.gmra.mxu0 %vm55_vm1, %v1554_v23  ;;  %1358 = vmatpush3.bf16.msra.mxu1 %v1448_v6  ;;  %v1464_v23 = vmov 1  }
 0x274   :  { %1351 = vmatprep.mubr.msk.bf16.mxu0 %vm1462_vm0, %v1461_v0  ;;  %1348 = vmatpush3.bf16.msra.mxu0 %v1447_v46 }
 0x275   :  { %641 = vrot.lane.b32.xlu0 %v443_v44, %s1463_s3  ;;  %1349 = vmatprep.subr.bf16.mxu0 %v1461_v0 }
 0x276   :  { %1385 = vmatprep.subr.bf16.mxu1 %v1461_v0  ;;  %1413 = vset.pattern.permute.xlu0 %v1464_v23 }
 0x277   :  { %1412 = vset.pattern.permute.xlu1 %v1464_v23 }
 0x278   :  { %1350 = vmatpush3.bf16.msra.mxu0 %v1448_v6  ;;  %864 = vperm.xlu1 %1412, %v781_v52  }
 0x279   :  { %867 = vperm.xlu0 %1413, %v782_v47  }
 0x27c   :  { %1414 = vset.pattern.permute.xlu1 %v1465_v48 }
 0x27d   :  { %876 = vperm.xlu0 %1413, %v785_v50   ;;  %806 = vperm.xlu1 %1414, %v783_v56  }
 0x281   :  { %888 = vperm.xlu0 %1413, %v789_v55   ;;  %1415 = vset.pattern.permute.xlu1 %v1464_v23 }
 0x282   :  { %870 = vperm.xlu1 %1415, %v783_v56  }
 0x285   :  { %900 = vperm.xlu0 %1413, %v1664_v58  }
 0x286   :  { %873 = vperm.xlu1 %1415, %v784_v59  }
 0x289   :  { %1430 = vset.pattern.permute.xlu0 %v1465_v48 }
 0x28a   :  { %800 = vperm.xlu0 %1430, %v781_v52   ;;  %1416 = vset.pattern.permute.xlu1 %v1465_v48 }
 0x28b   :  { %815 = vperm.xlu1 %1416, %v786_v60  }
 0x28e   :  { %809 = vperm.xlu0 %1430, %v784_v59  }
 0x28f   :  { %1417 = vset.pattern.permute.xlu1 %v1464_v23 }
 0x290   :  { %879 = vperm.xlu1 %1417, %v786_v60  }
 0x292   :  { %812 = vperm.xlu0 %1430, %v785_v50  }
 0x294   :  { %1418 = vset.pattern.permute.xlu1 %v1465_v48 }
 0x295   :  { %818 = vperm.xlu1 %1418, %v787_v63  }
 0x296   :  { %821 = vperm.xlu0 %1430, %v788_v61  }
 0x299   :  { %1419 = vset.pattern.permute.xlu1 %v1464_v23 }
 0x29a   :  { %824 = vperm.xlu0 %1430, %v789_v55   ;;  %882 = vperm.xlu1 %1419, %v787_v63  }
 0x29e   :  { %885 = vperm.xlu1 %1419, %v788_v61   ;;  %833 = vperm.xlu0 %1430, %v792_v39  }
 0x2a2   :  { %1420 = vset.pattern.permute.xlu1 %v1465_v48  ;;  %836 = vperm.xlu0 %1430, %v1664_v58  }
 0x2a3   :  { %827 = vperm.xlu1 %1420, %v790_v1  }
 0x2a7   :  { %1421 = vset.pattern.permute.xlu1 %v1464_v23 }
 0x2a8   :  { %891 = vperm.xlu1 %1421, %v790_v1  }
 0x2ac   :  { %1422 = vset.pattern.permute.xlu1 %v1465_v48 }
 0x2ad   :  { %830 = vperm.xlu1 %1422, %v791_v2  }
 0x2b1   :  { %1423 = vset.pattern.permute.xlu1 %v1464_v23 }
 0x2b2   :  { %894 = vperm.xlu1 %1423, %v791_v2   ;;  %v794_v2 = vld [vmem:[%s1858_s4 + $0x68] sm:$0xff] }
 0x2d7   :  { %v617_v29 = vpop.permute.xlu1 %616 }
 0x2db   :  { %v619_v3 = vpop.permute.xlu0 %618 }
 0x2df   :  { %v621_v4 = vpop.permute.xlu0 %620 }
 0x2e3   :  { %v640_v7 = vpop.permute.xlu0 %639 }
 0x2e4   :  { %v804_v44 = vpop.permute.xlu1 %803 }
 0x2e5   :  { %vm848_vm6 = vcmp.eq.s32.totalorder %v1721_v42, %v804_v44 }
 0x2e7   :  { %v642_v19 = vpop.permute.xlu0 %641 }
 0x2f3   :  { %v865_v45 = vpop.permute.xlu1 %864 }
 0x2f4   :  { %v868_v40 = vpop.permute.xlu0 %867  ;;  %vm911_vm8 = vcmp.eq.s32.totalorder %v1721_v42, %v865_v45 }
 0x2f5   :  { %vm912_vm5 = vcmp.eq.s32.totalorder %v1721_v42, %v868_v40 }
 0x2f6   :  { %vm928_vm7 = vmor %vm848_vm6, %vm912_vm5 }
 0x2f7   :  { %v944_v6 = vsel %vm928_vm7, 1.0, %v1461_v0 }
 0x2f8   :  { %v1718_v41 = vpop.permute.xlu0 %876 }
 0x2f9   :  { %vm915_vm3 = vcmp.eq.s32.totalorder %v1721_v42, %v1718_v41 }
 0x2fc   :  { %v1723_v43 = vpop.permute.xlu0 %888 }
 0x300   :  { %v1727_v9 = vpop.permute.xlu0 %900 }
 0x305   :  { %v801_v46 = vpop.permute.xlu0 %800 }
 0x306   :  { %vm847_vm9 = vcmp.eq.s32.totalorder %v1721_v42, %v801_v46 }
 0x307   :  { %vm927_vm10 = vmor %vm847_vm9, %vm911_vm8 }
 0x308   :  { %v943_v49 = vsel %vm927_vm10, 1.0, %v1461_v0 }
 0x309   :  { %v959_v47 = vpack.c.bf16 %v944_v6, %v943_v49 }
 0x32e   :  { %v603_v8 = vpop.f32.mrf.mxu1 }
 0x32f   :  { %v635_v10 = vmul.f32 %v1605_v5, %v603_v8 }
 0x330   :  { %v1345_v12 = vpop.f32.mrf.mxu1 }
 0x331   :  { %v645_v14 = vadd.f32 %v640_v7, %v635_v10 }
 0x332   :  { %v606_v13 = vpop.f32.mrf.mxu1 }
 0x333   :  { %v636_v17 = vmul.f32 %v1610_v15, %v606_v13  ;;  %v1337_v18 = vpop.f32.mrf.mxu0  ;;  %v651_v26 = vadd.f32 %v650_v16, %v645_v14 }
 0x334   :  { %v1346_v20 = vpop.f32.mrf.mxu1  ;;  %v612_v22 = vmul.f32 %v1590_v53, %v1337_v18 }
 0x335   :  { %v646_v21 = vadd.f32 %v642_v19, %v636_v17  ;;  %v550_v25 = vpop.f32.mrf.mxu0 }
 0x336   :  { %v610_v5 = vmul.f32 %v1592_v54, %v550_v25  ;;  %v627_v31 = vadd.f32 %v621_v4, %v612_v22  ;;  %v807_v4 = vpop.permute.xlu1 %806 }
 0x337   :  { %v652_v27 = vadd.f32 %v650_v16, %v646_v21  ;;  %v1338_v28 = vpop.f32.mrf.mxu0  ;;  %vm849_vm12 = vcmp.eq.s32.totalorder %v1721_v42, %v807_v4 }
 0x338   :  { %v625_v33 = vadd.f32 %v617_v29, %v610_v5  ;;  %v634_v35 = vadd.f32 %v631_v32, %v627_v31 }
 0x339   :  { %v653_v30 = vpack.c.bf16 %v652_v27, %v651_v26  ;;  %v553_v15 = vpop.f32.mrf.mxu0 }
 0x33a   :  { %v611_v34 = vmul.f32 %v1602_v62, %v553_v15  ;;  %v632_v36 = vadd.f32 %v631_v32, %v625_v33  ;;  %v711_v54 = vpack.c.bf16 %v634_v35, %v634_v35  ;;  %v796_v62 = vld [vmem:[%s1858_s4 + $0x78] sm:$0xff]  ;;  %v871_v7 = vpop.permute.xlu1 %870 }
 0x33b   :  { %1352 = vmatmul.mubr.msk.bf16.vlgmr.msra.gmra.mxu0 %vm169_vm2, %v653_v30  ;;  %845 = vperm.xlu0 %1430, %v796_v62   ;;  %vm913_vm13 = vcmp.eq.s32.totalorder %v1721_v42, %v871_v7 }
 0x33c   :  { %v626_v53 = vadd.f32 %v619_v3, %v611_v34  ;;  %1369 = vmatprep.mubr.msk.bf16.mxu0 %vm971_vm11, %v959_v47  ;;  %v795_v3 = vld [vmem:[%s1858_s4 + $0x70] sm:$0xff]  ;;  %vm929_vm5 = vmor %vm849_vm12, %vm913_vm13  ;;  %vm919_vm12 = vcmp.eq.s32.totalorder %v1721_v42, %v1723_v43 }
 0x33d   :  { %v945_v29 = vsel %vm929_vm5, 1.0, %v1461_v0 }
 0x33e   :  { %v633_v37 = vadd.f32 %v631_v32, %v626_v53  ;;  %v874_v8 = vpop.permute.xlu1 %873 }
 0x33f   :  { %1122 = vperm.xlu0 %1430, %v1598_v57   ;;  %vm914_vm14 = vcmp.eq.s32.totalorder %v1721_v42, %v874_v8 }
 0x340   :  { %v710_v38 = vpack.c.bf16 %v633_v37, %v632_v36 }
 0x342   :  { %1359 = vmatprep.mubr.msk.bf16.mxu1 %vm169_vm2, %v710_v38  ;;  %v816_v10 = vpop.permute.xlu1 %815 }
 0x343   :  { %1360 = vmatmul.mubr.msk.bf16.vlgmr.msra.gmra.mxu1 %vm169_vm2, %v711_v54 }
 0x344   :  { %1401 = vmatprep.mubr.msk.bf16.mxu1 %vm1462_vm0, %v1461_v0  ;;  %vm852_vm0 = vcmp.eq.s32.totalorder %v1721_v42, %v816_v10 }
 0x346   :  { %v880_v11 = vpop.permute.xlu1 %879 }
 0x347   :  { %vm916_vm1 = vcmp.eq.s32.totalorder %v1721_v42, %v880_v11 }
 0x348   :  { %vm932_vm8 = vmor %vm852_vm0, %vm916_vm1 }
 0x349   :  { %v948_v31 = vsel %vm932_vm8, 1.0, %v1461_v0 }
 0x34a   :  { %v819_v12 = vpop.permute.xlu1 %818 }
 0x34e   :  { %v883_v13 = vpop.permute.xlu1 %882 }
 0x34f   :  { %vm917_vm10 = vcmp.eq.s32.totalorder %v1721_v42, %v883_v13 }
 0x352   :  { %v886_v14 = vpop.permute.xlu1 %885 }
 0x356   :  { %v828_v16 = vpop.permute.xlu1 %827 }
 0x357   :  { %vm856_vm1 = vcmp.eq.s32.totalorder %v1721_v42, %v828_v16 }
 0x35a   :  { %v892_v17 = vpop.permute.xlu1 %891 }
 0x35e   :  { %v1748_v18 = vpop.permute.xlu1 %830 }
 0x362   :  { %v1750_v19 = vpop.permute.xlu1 %894 }
 0x3fb   :  { %v703_v50 = vpop.f32.mrf.mxu0 }
 0x3fd   :  { %v1353_v52 = vpop.f32.mrf.mxu0 }
 0x3ff   :  { %v706_v55 = vpop.f32.mrf.mxu0 }
 0x400   :  { %v1734_v56 = vpack.c.bf16 %v706_v55, %v703_v50 }
 0x401   :  { %v1354_v58 = vpop.f32.mrf.mxu0 }
 0x403   :  { %v1361_v59 = vpop.f32.mrf.mxu1 }
 0x405   :  { %v752_v60 = vpop.f32.mrf.mxu1 }
 0x406   :  { %v1424_v61 = vpack.i.bf16 %v752_v60, %v1361_v59  ;;  %v969_v59 = vsub.s32 4, %v1588_v51 }
 0x407   :  { %v1362_v63 = vpop.f32.mrf.mxu1 }
 0x408   :  { %1425 = vrot.lane.b32.xlu1 %v1424_v61, %s1463_s3  ;;  %v1812_v60 = vrot.slane %v1598_v57, %v969_v59 }
 0x409   :  { %v755_v1 = vpop.f32.mrf.mxu1 }
 0x40c   :  { %771 = vrot.lane.b32.xlu1 %v755_v1, %s1463_s3 }
 0x410   :  { %897 = vperm.xlu1 %1423, %v792_v39  }
 0x414   :  { %1429 = vset.pattern.permute.xlu1 %v1465_v48 }
 0x415   :  { %839 = vperm.xlu1 %1429, %v794_v2  }
 0x419   :  { %1431 = vset.pattern.permute.xlu1 %v1464_v23 }
 0x41a   :  { %903 = vperm.xlu1 %1431, %v794_v2  }
 0x41e   :  { %1432 = vset.pattern.permute.xlu1 %v1465_v48  ;;  %v810_v48 = vpop.permute.xlu0 %809 }
 0x41f   :  { %842 = vperm.xlu1 %1432, %v795_v3   ;;  %vm850_vm15 = vcmp.eq.s32.totalorder %v1721_v42, %v810_v48 }
 0x420   :  { %vm930_vm7 = vmor %vm850_vm15, %vm914_vm14  ;;  %vm918_vm14 = vcmp.eq.s32.totalorder %v1721_v42, %v886_v14 }
 0x421   :  { %v946_v30 = vsel %vm930_vm7, 1.0, %v1461_v0 }
 0x422   :  { %v813_v21 = vpop.permute.xlu0 %812  ;;  %v960_v15 = vpack.c.bf16 %v946_v30, %v945_v29 }
 0x423   :  { %1433 = vset.pattern.permute.xlu1 %v1464_v23  ;;  %vm851_vm6 = vcmp.eq.s32.totalorder %v1721_v42, %v813_v21 }
 0x424   :  { %906 = vperm.xlu1 %1433, %v795_v3   ;;  %vm931_vm9 = vmor %vm851_vm6, %vm915_vm3  ;;  %vm920_vm3 = vcmp.eq.s32.totalorder %v1721_v42, %v892_v17 }
 0x425   :  { %v947_v32 = vsel %vm931_vm9, 1.0, %v1461_v0  ;;  %vm936_vm7 = vmor %vm856_vm1, %vm920_vm3  ;;  %vm857_vm9 = vcmp.eq.s32.totalorder %v1721_v42, %v1748_v18 }
 0x426   :  { %v822_v5 = vpop.permute.xlu0 %821  ;;  %v961_v34 = vpack.c.bf16 %v948_v31, %v947_v32  ;;  %v952_v37 = vsel %vm936_vm7, 1.0, %v1461_v0 }
 0x427   :  { %vm854_vm15 = vcmp.eq.s32.totalorder %v1721_v42, %v822_v5 }
 0x428   :  { %909 = vperm.xlu1 %1433, %v796_v62   ;;  %vm934_vm6 = vmor %vm854_vm15, %vm918_vm14 }
 0x429   :  { %v950_v36 = vsel %vm934_vm6, 1.0, %v1461_v0 }
 0x42a   :  { %v825_v28 = vpop.permute.xlu0 %824 }
 0x42b   :  { %vm855_vm13 = vcmp.eq.s32.totalorder %v1721_v42, %v825_v28 }
 0x42c   :  { %vm935_vm5 = vmor %vm855_vm13, %vm919_vm12 }
 0x42d   :  { %v951_v38 = vsel %vm935_vm5, 1.0, %v1461_v0 }
 0x42e   :  { %v834_v33 = vpop.permute.xlu0 %833  ;;  %v963_v40 = vpack.c.bf16 %v952_v37, %v951_v38 }
 0x42f   :  { %vm858_vm12 = vcmp.eq.s32.totalorder %v1721_v42, %v834_v33 }
 0x432   :  { %v837_v54 = vpop.permute.xlu0 %836 }
 0x433   :  { %vm859_vm13 = vcmp.eq.s32.totalorder %v1721_v42, %v837_v54 }
 0x436   :  { %v846_v50 = vpop.permute.xlu0 %845 }
 0x47a   :  { %v1426_v20 = vpop.permute.xlu1 %1425 }
 0x47b   :  { %v1427_v23 = vunpack.i.l.bf16 %v1426_v20  ;;  %v1428_v22 = vunpack.i.h.bf16 %v1426_v20 }
 0x47d   :  { %v780_v24 = vpack.c.bf16 %v1427_v23, %v1427_v23 }
 0x47e   :  { %v772_v25 = vpop.permute.xlu1 %771 }
 0x47f   :  { %v779_v26 = vpack.c.bf16 %v772_v25, %v1428_v22  ;;  %1405 = vmatprep.subr.msk.bf16.mxu0 %vm297_vm4, %v780_v24  ;;  %v997_v27 = vsel %vm297_vm4, %v780_v24, 0  ;;  %vm853_vm4 = vcmp.eq.s32.totalorder %v1721_v42, %v819_v12 }
 0x480   :  { %1364 = vmatpush3.bf16.msra.mxu0 %v997_v27  ;;  %vm933_vm0 = vmor %vm853_vm4, %vm917_vm10  ;;  %vm921_vm4 = vcmp.eq.s32.totalorder %v1721_v42, %v1750_v19  ;;  %vm923_vm10 = vcmp.eq.s32.totalorder %v1721_v42, %v1727_v9 }
 0x481   :  { %1365 = vmatprep.subr.bf16.mxu0 %v779_v26  ;;  %v949_v35 = vsel %vm933_vm0, 1.0, %v1461_v0  ;;  %vm937_vm15 = vmor %vm857_vm9, %vm921_vm4  ;;  %vm862_vm9 = vcmp.eq.s32.totalorder %v1721_v42, %v846_v50 }
 0x482   :  { %v962_v62 = vpack.c.bf16 %v950_v36, %v949_v35  ;;  %vm939_vm0 = vmor %vm859_vm13, %vm923_vm10  ;;  %v953_v44 = vsel %vm937_vm15, 1.0, %v1461_v0 }
 0x483   :  { %v955_v9 = vsel %vm939_vm0, 1.0, %v1461_v0 }
 0x484   :  { %1366 = vmatpush3.bf16.msra.mxu0 %v779_v26 }
 0x485   :  { %1367 = vmatprep.subr.bf16.mxu0 %v1734_v56 }
 0x488   :  { %1368 = vmatpush3.bf16.msra.mxu0 %v1734_v56 }
 0x48b   :  { %1370 = vmatmul.mubr.msk.bf16.vlgmr.msra.gmra.mxu0 %vm971_vm11, %v960_v15  ;;  %v898_v53 = vpop.permute.xlu1 %897 }
 0x48c   :  { %1373 = vmatprep.mubr.msk.bf16.mxu0 %vm971_vm11, %v961_v34  ;;  %vm922_vm8 = vcmp.eq.s32.totalorder %v1721_v42, %v898_v53 }
 0x48d   :  { %vm938_vm14 = vmor %vm858_vm12, %vm922_vm8 }
 0x48e   :  { %v954_v43 = vsel %vm938_vm14, 1.0, %v1461_v0 }
 0x48f   :  { %v964_v46 = vpack.c.bf16 %v954_v43, %v953_v44 }
 0x490   :  { %v840_v39 = vpop.permute.xlu1 %839 }
 0x491   :  { %vm860_vm1 = vcmp.eq.s32.totalorder %v1721_v42, %v840_v39 }
 0x493   :  { %1374 = vmatmul.mubr.msk.bf16.gmra.mxu0 %vm971_vm11, %v962_v62 }
 0x494   :  { %1377 = vmatprep.mubr.msk.bf16.mxu0 %vm971_vm11, %v963_v40 }
 0x495   :  { %v904_v41 = vpop.permute.xlu1 %903 }
 0x496   :  { %vm924_vm3 = vcmp.eq.s32.totalorder %v1721_v42, %v904_v41 }
 0x497   :  { %vm940_vm5 = vmor %vm860_vm1, %vm924_vm3 }
 0x498   :  { %v956_v45 = vsel %vm940_vm5, 1.0, %v1461_v0 }
 0x499   :  { %v965_v6 = vpack.c.bf16 %v956_v45, %v955_v9 }
 0x49a   :  { %v843_v49 = vpop.permute.xlu1 %842 }
 0x49b   :  { %1378 = vmatmul.mubr.msk.bf16.gmra.mxu0 %vm971_vm11, %v964_v46  ;;  %vm861_vm7 = vcmp.eq.s32.totalorder %v1721_v42, %v843_v49 }
 0x49c   :  { %1381 = vmatprep.mubr.msk.bf16.mxu0 %vm971_vm11, %v965_v6 }
 0x49f   :  { %v907_v47 = vpop.permute.xlu1 %906 }
 0x4a0   :  { %vm925_vm6 = vcmp.eq.s32.totalorder %v1721_v42, %v907_v47 }
 0x4a1   :  { %vm941_vm8 = vmor %vm861_vm7, %vm925_vm6 }
 0x4a2   :  { %v957_v55 = vsel %vm941_vm8, 1.0, %v1461_v0 }
 0x4a3   :  { %v910_v52 = vpop.permute.xlu1 %909 }
 0x4a4   :  { %vm926_vm4 = vcmp.eq.s32.totalorder %v1721_v42, %v910_v52 }
 0x4a5   :  { %vm942_vm10 = vmor %vm862_vm9, %vm926_vm4 }
 0x4a6   :  { %v958_v56 = vsel %vm942_vm10, 1.0, %v1461_v0 }
 0x4a7   :  { %v966_v58 = vpack.c.bf16 %v958_v56, %v957_v55 }
 0x4a9   :  { %1382 = vmatmul.mubr.msk.bf16.gmra.mxu0 %vm971_vm11, %v966_v58 }
 0x54b   :  { %v1371_v61 = vpop.f32.mrf.mxu0 }
 0x54c   :  { %v1042_v1 = vadd.f32 %v1371_v61, %v1812_v60 }
 0x54d   :  { %v1033_v63 = vpop.f32.mrf.mxu0 }
 0x54e   :  { %v1034_v42 = vadd.f32 %v1033_v63, %v1812_v60  ;;  %v1098_v7 = vmax.f32 %v1042_v1, 0.0  ;;  %v45_v63 = vld [vmem:[%s1852_s5 + $0x48] sm:$0x1]  ;;  %v1123_v1 = vpop.permute.xlu0 %1122 }
 0x54f   :  { %v1372_v2 = vpop.f32.mrf.mxu0 }
 0x550   :  { %v1045_v3 = vadd.f32 %v1372_v2, %v1812_v60  ;;  %v1096_v12 = vmax.f32 %v1034_v42, 0.0  ;;  %v1124_v2 = vrot.slane %v1123_v1, 5 }
 0x551   :  { %v1036_v4 = vpop.f32.mrf.mxu0 }
 0x552   :  { %v1099_v8 = vmax.f32 %v1045_v3, 0.0  ;;  %v1037_v10 = vadd.f32 %v1036_v4, %v1812_v60 }
 0x553   :  { %v1375_v11 = vpop.f32.mrf.mxu0 }
 0x554   :  { %v1113_v51 = vpack.c.bf16 %v1099_v8, %v1098_v7  ;;  %v1097_v13 = vmax.f32 %v1037_v10, 0.0  ;;  %v1058_v9 = vadd.f32 %v1375_v11, %v1812_v60 }
 0x555   :  { %v1049_v57 = vpop.f32.mrf.mxu0 }
 0x556   :  { %v1112_v14 = vpack.c.bf16 %v1097_v13, %v1096_v12  ;;  %v1102_v6 = vmax.f32 %v1058_v9, 0.0  ;;  %v1050_v50 = vadd.f32 %v1049_v57, %v1812_v60  ;;  %v1133_v61 = vsel %vm169_vm2, %v1113_v51, 0 }
 0x557   :  { %v1376_v16 = vpop.f32.mrf.mxu0 }
 0x558   :  { %v1061_v43 = vadd.f32 %v1376_v16, %v1812_v60  ;;  %v1100_v56 = vmax.f32 %v1050_v50, 0.0 }
 0x559   :  { %v1052_v17 = vpop.f32.mrf.mxu0 }
 0x55a   :  { %v1103_v45 = vmax.f32 %v1061_v43, 0.0  ;;  %v1053_v47 = vadd.f32 %v1052_v17, %v1812_v60 }
 0x55b   :  { %v1379_v18 = vpop.f32.mrf.mxu0 }
 0x55c   :  { %v1074_v53 = vadd.f32 %v1379_v18, %v1812_v60  ;;  %v1115_v49 = vpack.c.bf16 %v1103_v45, %v1102_v6  ;;  %v1101_v52 = vmax.f32 %v1053_v47, 0.0 }
 0x55d   :  { %v1065_v19 = vpop.f32.mrf.mxu0 }
 0x55e   :  { %v1106_v37 = vmax.f32 %v1074_v53, 0.0  ;;  %v1066_v39 = vadd.f32 %v1065_v19, %v1812_v60  ;;  %v1139_v55 = vsel %vm169_vm2, %v1115_v49, 0  ;;  %v1114_v58 = vpack.c.bf16 %v1101_v52, %v1100_v56 }
 0x55f   :  { %v1380_v48 = vpop.f32.mrf.mxu0 }
 0x560   :  { %v1077_v33 = vadd.f32 %v1380_v48, %v1812_v60  ;;  %v1104_v41 = vmax.f32 %v1066_v39, 0.0  ;;  %v1136_v59 = vsel %vm169_vm2, %v1114_v58, 0 }
 0x561   :  { %v1068_v20 = vpop.f32.mrf.mxu0 }
 0x562   :  { %v1107_v35 = vmax.f32 %v1077_v33, 0.0  ;;  %v1069_v54 = vadd.f32 %v1068_v20, %v1812_v60 }
 0x564   :  { %v1117_v38 = vpack.c.bf16 %v1107_v35, %v1106_v37  ;;  %v1105_v62 = vmax.f32 %v1069_v54, 0.0 }
 0x566   :  { %v1145_v40 = vsel %vm169_vm2, %v1117_v38, 0  ;;  %v1116_v44 = vpack.c.bf16 %v1105_v62, %v1104_v41 }
 0x568   :  { %v1142_v46 = vsel %vm169_vm2, %v1116_v44, 0 }
 0x569   :  { %v1383_v21 = vpop.f32.mrf.mxu0 }
 0x56a   :  { %v1090_v22 = vadd.f32 %v1383_v21, %v1812_v60 }
 0x56b   :  { %v1081_v23 = vpop.f32.mrf.mxu0 }
 0x56c   :  { %v1110_v26 = vmax.f32 %v1090_v22, 0.0  ;;  %v1082_v29 = vadd.f32 %v1081_v23, %v1812_v60 }
 0x56d   :  { %v1384_v24 = vpop.f32.mrf.mxu0 }
 0x56e   :  { %v1093_v25 = vadd.f32 %v1384_v24, %v1812_v60  ;;  %v1108_v15 = vmax.f32 %v1082_v29, 0.0 }
 0x56f   :  { %v1084_v5 = vpop.f32.mrf.mxu0 }
 0x570   :  { %v1111_v27 = vmax.f32 %v1093_v25, 0.0  ;;  %v1085_v28 = vadd.f32 %v1084_v5, %v1812_v60  ;;  %v1130_v60 = vsel %vm169_vm2, %v1112_v14, 0 }
 0x572   :  { %v1119_v30 = vpack.c.bf16 %v1111_v27, %v1110_v26  ;;  %v1109_v31 = vmax.f32 %v1085_v28, 0.0 }
 0x574   :  { %v1151_v32 = vsel %vm169_vm2, %v1119_v30, 0  ;;  %v1118_v34 = vpack.c.bf16 %v1109_v31, %v1108_v15 }
 0x575   :  { %1386 = vmatpush3.bf16.xpose.msra.mxu1 %v1151_v32 }
 0x576   :  { %1387 = vmatprep.subr.bf16.mxu1 %v1461_v0  ;;  %v1148_v36 = vsel %vm169_vm2, %v1118_v34, 0 }
 0x57d   :  { %1388 = vmatpush3.bf16.xpose.msra.mxu1 %v1148_v36 }
 0x57e   :  { %1389 = vmatprep.subr.bf16.mxu1 %v1461_v0 }
 0x585   :  { %1390 = vmatpush3.bf16.xpose.msra.mxu1 %v1145_v40 }
 0x586   :  { %1391 = vmatprep.subr.bf16.mxu1 %v1461_v0 }
 0x58d   :  { %1392 = vmatpush3.bf16.xpose.msra.mxu1 %v1142_v46 }
 0x58e   :  { %1393 = vmatprep.subr.bf16.mxu1 %v1461_v0 }
 0x595   :  { %1394 = vmatpush3.bf16.xpose.msra.mxu1 %v1139_v55 }
 0x596   :  { %1395 = vmatprep.subr.bf16.mxu1 %v1461_v0 }
 0x59d   :  { %1396 = vmatpush3.bf16.xpose.msra.mxu1 %v1136_v59 }
 0x59e   :  { %1397 = vmatprep.subr.bf16.mxu1 %v1461_v0 }
 0x5a5   :  { %1398 = vmatpush3.bf16.xpose.msra.mxu1 %v1133_v61 }
 0x5a6   :  { %1399 = vmatprep.subr.bf16.mxu1 %v1461_v0 }
 0x5ad   :  { %1400 = vmatpush3.bf16.xpose.msra.mxu1 %v1130_v60 }
 0x5b4   :  { %1402 = vmatmul.mubr.msk.bf16.vlgmr.msra.gmra.mxu1 %vm169_vm2, %v45_v63 }
 0x674   :  { %v1187_v42 = vpop.f32.mrf.mxu1 }
 0x675   :  { %v1188_v3 = vadd.f32 %v1187_v42, %v1124_v2 }
 0x676   :  { %v1403_v4 = vpop.f32.mrf.mxu1 }
 0x677   :  { %1193 = vst [vmem:[%s1859_s7] sm:$0x1] %v1188_v3 }
 0x678   :  { %v1190_v7 = vpop.f32.mrf.mxu1 }
 0x67a   :  { %v1404_v0 = vpop.f32.mrf.mxu1 }

</bundles_post_ra>
